<compile_context>
chip_gen: v6e
topology: v6e:2x2x1
jax: 0.10.0
libtpu: 0.0.40
codegen_flags: <defaults>
</compile_context>

<pallas_src>
import numpy as np
import jax
import jax.numpy as jnp
from jax.experimental import pallas as pl
from jax.experimental.pallas import tpu as pltpu


def _cdiv(a, b):
    return -(-a // b)


def _round_up(x, m):
    return ((x + m - 1) // m) * m


def _leaky_relu(x, slope=0.2):
    return jnp.where(x > 0, x, slope * x)


# --------------------------------------------------------------------------
# Kernel
# --------------------------------------------------------------------------
def discriminator_kernel(x_ref, w1_ref, b1_ref, w2_ref, b2_ref, w3_ref, b3_ref,
                         out_ref, acc_ref):
    k = pl.program_id(1)

    @pl.when(k == 0)
    def _init():
        acc_ref[...] = jnp.zeros_like(acc_ref)

    # Layer 1 partial product: (TILE_B, TK) @ (TK, 512) on the MXU
    # (bf16 inputs, f32 accumulation into the VMEM scratch).
    x = x_ref[...].astype(jnp.bfloat16)
    acc_ref[...] += jnp.dot(x, w1_ref[...], preferred_element_type=jnp.float32)

    @pl.when(k == pl.num_programs(1) - 1)
    def _finish():
        h1 = _leaky_relu(acc_ref[...] + b1_ref[...])            # f32 (TILE_B, 512)

        # Layer 2: (TILE_B, 512) @ (512, 256) on the MXU.
        h2 = jnp.dot(h1.astype(jnp.bfloat16), w2_ref[...],
                     preferred_element_type=jnp.float32)
        h2 = _leaky_relu(h2 + b2_ref[...])                      # f32 (TILE_B, 256)

        # Layer 3: 256 -> 1 as VPU multiply + XLU lane reduce.
        logits = jnp.sum(h2 * w3_ref[...], axis=-1, keepdims=True) + b3_ref[...]
        out_ref[...] = jax.nn.sigmoid(logits).astype(out_ref.dtype)


# --------------------------------------------------------------------------
# Tiling / spec helpers
# --------------------------------------------------------------------------
def _choose_tile_b(B, max_tile=256):
    """>= 2 grid tiles for batches big enough to split (v7x megacore); small
    batches only round up to the 8-row sublane requirement."""
    if B <= max_tile // 2:
        return _round_up(B, 8)
    n_tiles = max(2, _cdiv(B, max_tile))
    return min(max_tile, _round_up(_cdiv(B, n_tiles), 8))


def _choose_tile_k(D, max_tk=2048):
    """Largest 128-multiple divisor of D that is <= max_tk (so the reduction
    axis has no ragged blocks); fall back to a fully-resident w1."""
    if D <= max_tk:
        return D
    for tk in range(max_tk, 127, -128):
        if D % tk == 0:
            return tk
    return D


def _resident_spec(shape, index_map):
    """Constant-index block: single buffer (no point double-buffering a block
    whose index never changes). Falls back if pipeline_mode is unavailable."""
    try:
        return pl.BlockSpec(shape, index_map, pipeline_mode=pl.Buffered(1))
    except Exception:
        return pl.BlockSpec(shape, index_map)


# --------------------------------------------------------------------------
# Params: one-time conversion (hoisted out of the per-call path)
# --------------------------------------------------------------------------
def prepare_params(params):
    return {
        "w1": jnp.asarray(params["w1"], jnp.bfloat16),                 # (D, 512)
        "b1": jnp.asarray(params["b1"], jnp.float32).reshape(1, 512),
        "w2": jnp.asarray(params["w2"], jnp.bfloat16),                 # (512, 256)
        "b2": jnp.asarray(params["b2"], jnp.float32).reshape(1, 256),
        "w3": jnp.asarray(params["w3"], jnp.float32).reshape(1, 256),  # lane-dense row
        "b3": jnp.asarray(params["b3"], jnp.float32).reshape(1, 1),
    }


# --------------------------------------------------------------------------
# Forward wrapper
# --------------------------------------------------------------------------
def discriminator_forward(img, prep, *, max_tile_b=256, max_tile_k=2048):
    """img: (B, C, H, W). prep: output of prepare_params. Returns (B, 1) f32."""
    B = img.shape[0]
    x = img.reshape(B, -1)                  # row-major, like torch .view(B, -1)
    if x.dtype != jnp.float32:
        x = x.astype(jnp.float32)
    D = x.shape[1]
    assert prep["w1"].shape[0] == D

    tile_b = min(max_tile_b, _choose_tile_b(B, max_tile_b))
    tk = _choose_tile_k(D, max_tile_k)
    num_b = _cdiv(B, tile_b)                # ragged last tile handled by Pallas
    num_k = D // tk                         # tk always divides D (else tk == D)

    # BlockSpecs: x streams per (batch, K) tile; weights/biases stay resident.
    x_spec = pl.BlockSpec((tile_b, tk), lambda i, k: (i, k))
    if num_k > 1:
        w1_spec = pl.BlockSpec((tk, 512), lambda i, k: (k, 0))
    else:
        w1_spec = _resident_spec((tk, 512), lambda i, k: (0, 0))
    b1_spec = _resident_spec((1, 512), lambda i, k: (0, 0))
    w2_spec = _resident_spec((512, 256), lambda i, k: (0, 0))
    b2_spec = _resident_spec((1, 256), lambda i, k: (0, 0))
    w3_spec = _resident_spec((1, 256), lambda i, k: (0, 0))
    b3_spec = _resident_spec((1, 1), lambda i, k: (0, 0))
    out_spec = pl.BlockSpec((tile_b, 1), lambda i, k: (i, 0))

    # Explicit VMEM budget (v5e 16 MiB / v7x 32 MiB scoped defaults).
    vmem_need = (2 * tile_b * tk * 4                          # x (f32, double buffered)
                 + (2 if num_k > 1 else 1) * tk * 512 * 2     # w1 bf16
                 + 512 * 256 * 2                              # w2 bf16 (single buffer)
                 + (512 + 256 + 256 + 1) * 4                  # b1, b2, w3, b3 (f32)
                 + tile_b * 512 * 4                           # layer-1 accumulator
                 + 2 * tile_b * 4)                            # output tile
    vmem_limit = int(min(64 * 1024 * 1024, max(32 * 1024 * 1024, 2 * vmem_need)))

    flops = 2 * B * (D * 512 + 512 * 256 + 256)
    bytes_accessed = (B * D * 4 + D * 512 * 2 + 512 * 256 * 2
                      + (512 + 256 + 256 + 1) * 4 + B * 4)

    out = pl.pallas_call(
        discriminator_kernel,
        out_shape=jax.ShapeDtypeStruct((B, 1), jnp.float32),
        grid=(num_b, num_k),
        in_specs=[x_spec, w1_spec, b1_spec, w2_spec, b2_spec, w3_spec, b3_spec],
        out_specs=out_spec,
        scratch_shapes=[pltpu.VMEM((tile_b, 512), jnp.float32)],
        compiler_params=pltpu.CompilerParams(
            dimension_semantics=("parallel", "arbitrary"),
            vmem_limit_bytes=vmem_limit),
        cost_estimate=pl.CostEstimate(
            flops=flops, transcendentals=B, bytes_accessed=bytes_accessed),
    )(x, prep["w1"], prep["b1"], prep["w2"], prep["b2"], prep["w3"], prep["b3"])

    return out


# --------------------------------------------------------------------------
# Init + pure-JAX reference (matches the PyTorch module)
# --------------------------------------------------------------------------
def init_params(key, in_dim):
    """torch.nn.Linear default init: U(-1/sqrt(fan_in), 1/sqrt(fan_in))."""
    dims = [(in_dim, 512), (512, 256), (256, 1)]
    params = {}
    for i, (fan_in, fan_out) in enumerate(dims, start=1):
        key, kw, kb = jax.random.split(key, 3)
        bound = 1.0 / np.sqrt(fan_in)
        params[f"w{i}"] = jax.random.uniform(
            kw, (fan_in, fan_out), jnp.float32, -bound, bound)
        params[f"b{i}"] = jax.random.uniform(
            kb, (1, fan_out), jnp.float32, -bound, bound)
    return params


def reference_forward(img, params):
    x = img.reshape(img.shape[0], -1)
    h = x @ params["w1"] + params["b1"]
    h = jnp.where(h > 0, h, 0.2 * h)
    h = h @ params["w2"] + params["b2"]
    h = jnp.where(h > 0, h, 0.2 * h)
    h = h @ params["w3"] + params["b3"]
    return jax.nn.sigmoid(h)


if __name__ == "__main__":
    key = jax.random.PRNGKey(0)

    # Case 1: tiny batch (single batch tile, single K block).
    # channels=1, img_size=16 -> D=256.
    B1, C1, H1 = 8, 1, 16
    key, k_img1, k_par1 = jax.random.split(key, 3)
    img1 = jax.random.normal(k_img1, (B1, C1, H1, H1), jnp.float32)
    params1 = init_params(k_par1, C1 * H1 * H1)
    prep1 = prepare_params(params1)
    out1 = jax.block_until_ready(discriminator_forward(img1, prep1))
    ref1 = reference_forward(img1, params1)
    np.testing.assert_allclose(np.asarray(out1), np.asarray(ref1),
                               rtol=2e-2, atol=2e-2)
    assert out1.shape == (B1, 1)

    # Case 2: exercises the ragged multi-tile "parallel" batch grid (2 tiles)
    # and the K reduction grid axis (D=3072 -> tk=1536, 2 K steps).
    B2, C2, H2 = 136, 3, 32
    key, k_img2, k_par2 = jax.random.split(key, 3)
    img2 = jax.random.normal(k_img2, (B2, C2, H2, H2), jnp.float32)
    params2 = init_params(k_par2, C2 * H2 * H2)
    prep2 = prepare_params(params2)
    out2 = jax.block_until_ready(discriminator_forward(img2, prep2))
    ref2 = reference_forward(img2, params2)
    np.testing.assert_allclose(np.asarray(out2), np.asarray(ref2),
                               rtol=2e-2, atol=2e-2)
    assert out2.shape == (B2, 1)

    print("KERNEL_OK")
</pallas_src>

<mosaic_0001>
module attributes {stable_mosaic.version = 11 : i64} {
  func.func @discriminator_kernel(%arg0: i32, %arg1: i32, %arg2: memref<8x256xf32, #tpu.memory_space<vmem>>, %arg3: memref<256x512xbf16, #tpu.memory_space<vmem>>, %arg4: memref<1x512xf32, #tpu.memory_space<vmem>>, %arg5: memref<512x256xbf16, #tpu.memory_space<vmem>>, %arg6: memref<1x256xf32, #tpu.memory_space<vmem>>, %arg7: memref<1x256xf32, #tpu.memory_space<vmem>>, %arg8: memref<1x1xf32, #tpu.memory_space<vmem>>, %arg9: memref<8x1xf32, #tpu.memory_space<vmem>>, %arg10: memref<8x512xf32, #tpu.memory_space<vmem>>) attributes {dimension_semantics = [#tpu.dimension_semantics<parallel>, #tpu.dimension_semantics<arbitrary>], iteration_bounds = array<i64: 1, 1>, scalar_prefetch = 0 : i64, scratch_operands = 1 : i64, tpu.core_type = #tpu.core_type<tc>, window_params = [{transform_indices = @transform_0, window_bounds = array<i64: 8, 256>}, {pipeline_mode = #tpu.pipeline_mode<synchronous>, transform_indices = @transform_1, window_bounds = array<i64: 256, 512>}, {pipeline_mode = #tpu.pipeline_mode<synchronous>, transform_indices = @transform_2, window_bounds = array<i64: 1, 512>}, {pipeline_mode = #tpu.pipeline_mode<synchronous>, transform_indices = @transform_3, window_bounds = array<i64: 512, 256>}, {pipeline_mode = #tpu.pipeline_mode<synchronous>, transform_indices = @transform_4, window_bounds = array<i64: 1, 256>}, {pipeline_mode = #tpu.pipeline_mode<synchronous>, transform_indices = @transform_5, window_bounds = array<i64: 1, 256>}, {pipeline_mode = #tpu.pipeline_mode<synchronous>, transform_indices = @transform_6, window_bounds = array<i64: 1, 1>}, {transform_indices = @transform_7, window_bounds = array<i64: 8, 1>}]} {
    %c0_i32 = arith.constant 0 : i32
    %0 = arith.cmpi eq, %arg1, %c0_i32 : i32
    %1 = arith.extui %0 : i1 to i32
    %c0_i32_0 = arith.constant 0 : i32
    %2 = arith.cmpi ne, %1, %c0_i32_0 : i32
    scf.if %2 {
      %cst_10 = arith.constant 0.000000e+00 : f32
      %13 = vector.broadcast %cst_10 : f32 to vector<8x512xf32>
      %c0_11 = arith.constant 0 : index
      %c0_12 = arith.constant 0 : index
      %14 = vector.load %arg10[%c0_11, %c0_12] : memref<8x512xf32, #tpu.memory_space<vmem>>, vector<8x512xf32>
      tpu.vector_store %arg10[%c0_11, %c0_12], %13 {strides = array<i32>} : memref<8x512xf32, #tpu.memory_space<vmem>>, vector<8x512xf32>,
    } else {
    }
    %c0 = arith.constant 0 : index
    %c0_1 = arith.constant 0 : index
    %3 = vector.load %arg2[%c0, %c0_1] : memref<8x256xf32, #tpu.memory_space<vmem>>, vector<8x256xf32>
    %4 = arith.truncf %3 : vector<8x256xf32> to vector<8x256xbf16>
    %c0_2 = arith.constant 0 : index
    %c0_3 = arith.constant 0 : index
    %5 = vector.load %arg10[%c0_2, %c0_3] : memref<8x512xf32, #tpu.memory_space<vmem>>, vector<8x512xf32>
    %c0_4 = arith.constant 0 : index
    %c0_5 = arith.constant 0 : index
    %6 = vector.load %arg3[%c0_4, %c0_5] : memref<256x512xbf16, #tpu.memory_space<vmem>>, vector<256x512xbf16>
    %cst = arith.constant dense<0.000000e+00> : vector<8x512xf32>
    %7 = tpu.matmul %4, %6, %cst {dimension_numbers = #tpu.dot_dimension_numbers<[1], [0], [0], [1], [0, 0, 1, 1], [], []>} : vector<8x256xbf16>, vector<256x512xbf16>, vector<8x512xf32> -> vector<8x512xf32>
    %8 = arith.addf %5, %7 : vector<8x512xf32>
    %c0_6 = arith.constant 0 : index
    %c0_7 = arith.constant 0 : index
    %9 = vector.load %arg10[%c0_6, %c0_7] : memref<8x512xf32, #tpu.memory_space<vmem>>, vector<8x512xf32>
    tpu.vector_store %arg10[%c0_6, %c0_7], %8 {strides = array<i32>} : memref<8x512xf32, #tpu.memory_space<vmem>>, vector<8x512xf32>,
    %c0_i32_8 = arith.constant 0 : i32
    %10 = arith.cmpi eq, %arg1, %c0_i32_8 : i32
    %11 = arith.extui %10 : i1 to i32
    %c0_i32_9 = arith.constant 0 : i32
    %12 = arith.cmpi ne, %11, %c0_i32_9 : i32
    scf.if %12 {
      %c0_10 = arith.constant 0 : index
      %c0_11 = arith.constant 0 : index
      %13 = vector.load %arg10[%c0_10, %c0_11] : memref<8x512xf32, #tpu.memory_space<vmem>>, vector<8x512xf32>
      %c0_12 = arith.constant 0 : index
      %c0_13 = arith.constant 0 : index
      %14 = vector.load %arg4[%c0_12, %c0_13] : memref<1x512xf32, #tpu.memory_space<vmem>>, vector<1x512xf32>
      %15 = vector.broadcast %14 : vector<1x512xf32> to vector<8x512xf32>
      %16 = arith.addf %13, %15 : vector<8x512xf32>
      %cst_14 = arith.constant 0.000000e+00 : f32
      %17 = vector.broadcast %cst_14 : f32 to vector<8x512xf32>
      %18 = arith.cmpf ogt, %16, %17 : vector<8x512xf32>
      %cst_15 = arith.constant 2.000000e-01 : f32
      %19 = vector.broadcast %cst_15 : f32 to vector<8x512xf32>
      %20 = arith.mulf %19, %16 : vector<8x512xf32>
      %21 = arith.select %18, %16, %20 : vector<8x512xi1>, vector<8x512xf32>
      %22 = arith.truncf %21 : vector<8x512xf32> to vector<8x512xbf16>
      %c0_16 = arith.constant 0 : index
      %c0_17 = arith.constant 0 : index
      %23 = vector.load %arg5[%c0_16, %c0_17] : memref<512x256xbf16, #tpu.memory_space<vmem>>, vector<512x256xbf16>
      %cst_18 = arith.constant dense<0.000000e+00> : vector<8x256xf32>
      %24 = tpu.matmul %22, %23, %cst_18 {dimension_numbers = #tpu.dot_dimension_numbers<[1], [0], [0], [1], [0, 0, 1, 1], [], []>} : vector<8x512xbf16>, vector<512x256xbf16>, vector<8x256xf32> -> vector<8x256xf32>
      %c0_19 = arith.constant 0 : index
      %c0_20 = arith.constant 0 : index
      %25 = vector.load %arg6[%c0_19, %c0_20] : memref<1x256xf32, #tpu.memory_space<vmem>>, vector<1x256xf32>
      %26 = vector.broadcast %25 : vector<1x256xf32> to vector<8x256xf32>
      %27 = arith.addf %24, %26 : vector<8x256xf32>
      %cst_21 = arith.constant 0.000000e+00 : f32
      %28 = vector.broadcast %cst_21 : f32 to vector<8x256xf32>
      %29 = arith.cmpf ogt, %27, %28 : vector<8x256xf32>
      %cst_22 = arith.constant 2.000000e-01 : f32
      %30 = vector.broadcast %cst_22 : f32 to vector<8x256xf32>
      %31 = arith.mulf %30, %27 : vector<8x256xf32>
      %32 = arith.select %29, %27, %31 : vector<8x256xi1>, vector<8x256xf32>
      %c0_23 = arith.constant 0 : index
      %c0_24 = arith.constant 0 : index
      %33 = vector.load %arg7[%c0_23, %c0_24] : memref<1x256xf32, #tpu.memory_space<vmem>>, vector<1x256xf32>
      %34 = vector.broadcast %33 : vector<1x256xf32> to vector<8x256xf32>
      %35 = arith.mulf %32, %34 : vector<8x256xf32>
      %cst_25 = arith.constant dense<0.000000e+00> : vector<8xf32>
      %36 = vector.multi_reduction <add>, %35, %cst_25 [1] : vector<8x256xf32> to vector<8xf32>
      %37 = vector.shape_cast %36 : vector<8xf32> to vector<8x1xf32>
      %c0_26 = arith.constant 0 : index
      %c0_27 = arith.constant 0 : index
      %38 = vector.load %arg8[%c0_26, %c0_27] : memref<1x1xf32, #tpu.memory_space<vmem>>, vector<1x1xf32>
      %39 = vector.broadcast %38 : vector<1x1xf32> to vector<8x1xf32>
      %40 = arith.addf %37, %39 : vector<8x1xf32>
      %41 = arith.negf %40 : vector<8x1xf32>
      %42 = math.exp %41 : vector<8x1xf32>
      %cst_28 = arith.constant 1.000000e+00 : f32
      %43 = vector.broadcast %cst_28 : f32 to vector<8x1xf32>
      %44 = arith.addf %43, %42 : vector<8x1xf32>
      %45 = arith.divf %43, %44 : vector<8x1xf32>
      %c0_29 = arith.constant 0 : index
      %c0_30 = arith.constant 0 : index
      %46 = vector.load %arg9[%c0_29, %c0_30] : memref<8x1xf32, #tpu.memory_space<vmem>>, vector<8x1xf32>
      tpu.vector_store %arg9[%c0_29, %c0_30], %45 {strides = array<i32>} : memref<8x1xf32, #tpu.memory_space<vmem>>, vector<8x1xf32>,
    } else {
    }
    return
  }
  func.func @transform_0(%arg0: i32, %arg1: i32) -> (i32, i32) {
    %c0_i32 = arith.constant 0 : i32
    return %arg0, %arg1 : i32, i32
  }
  func.func @transform_1(%arg0: i32, %arg1: i32) -> (i32, i32) {
    %c0_i32 = arith.constant 0 : i32
    %c0_i32_0 = arith.constant 0 : i32
    %c0_i32_1 = arith.constant 0 : i32
    return %c0_i32, %c0_i32_0 : i32, i32
  }
  func.func @transform_2(%arg0: i32, %arg1: i32) -> (i32, i32) {
    %c0_i32 = arith.constant 0 : i32
    %c0_i32_0 = arith.constant 0 : i32
    %c0_i32_1 = arith.constant 0 : i32
    return %c0_i32, %c0_i32_0 : i32, i32
  }
  func.func @transform_3(%arg0: i32, %arg1: i32) -> (i32, i32) {
    %c0_i32 = arith.constant 0 : i32
    %c0_i32_0 = arith.constant 0 : i32
    %c0_i32_1 = arith.constant 0 : i32
    return %c0_i32, %c0_i32_0 : i32, i32
  }
  func.func @transform_4(%arg0: i32, %arg1: i32) -> (i32, i32) {
    %c0_i32 = arith.constant 0 : i32
    %c0_i32_0 = arith.constant 0 : i32
    %c0_i32_1 = arith.constant 0 : i32
    return %c0_i32, %c0_i32_0 : i32, i32
  }
  func.func @transform_5(%arg0: i32, %arg1: i32) -> (i32, i32) {
    %c0_i32 = arith.constant 0 : i32
    %c0_i32_0 = arith.constant 0 : i32
    %c0_i32_1 = arith.constant 0 : i32
    return %c0_i32, %c0_i32_0 : i32, i32
  }
  func.func @transform_6(%arg0: i32, %arg1: i32) -> (i32, i32) {
    %c0_i32 = arith.constant 0 : i32
    %c0_i32_0 = arith.constant 0 : i32
    %c0_i32_1 = arith.constant 0 : i32
    return %c0_i32, %c0_i32_0 : i32, i32
  }
  func.func @transform_7(%arg0: i32, %arg1: i32) -> (i32, i32) {
    %c0_i32 = arith.constant 0 : i32
    %c0_i32_0 = arith.constant 0 : i32
    return %arg0, %c0_i32 : i32, i32
  }
}

</mosaic_0001>

<bundles_post_ra>
// kernel: tpu_custom_call.1
= control target key start
LH: loop header
LB: loop body
LE: loop exit
PB: predicated region body
PF: predicated region fallthrough
CT: control target
= control target key end

     0   :  { %s1607_s0 = inlined_call_operand.hbm [shape: f32[8,256], index: 0, kind: input, shape index: {}]   ;;  %s1608_s1 = inlined_call_operand.hbm [shape: bf16[256,512], index: 1, kind: input, shape index: {}]   ;;  %s1609_s2 = inlined_call_operand.vmem [shape: f32[1,512], index: 2, kind: input, shape index: {}]   ;;  %s1610_s3 = inlined_call_operand.hbm [shape: bf16[512,256], index: 3, kind: input, shape index: {}]   ;;  %s1611_s4 = inlined_call_operand.vmem [shape: f32[1,256], index: 4, kind: input, shape index: {}]   ;;  %s1612_s5 = inlined_call_operand.vmem [shape: f32[1,256], index: 5, kind: input, shape index: {}]   ;;  %s1613_s6 = inlined_call_operand.<no memory space> [shape: f32[1,1], index: 6, kind: input, shape index: {}]   ;;  %s1614_s7 = inlined_call_operand.vmem [shape: f32[8,1], index: 7, kind: output, shape index: {}]  }
   0x1   :  { %v12_v0 = vstv %s1613_s6 }
   0x2   :  { %13 = vst [vmem:[#allocation3] sm:$0x1] %v12_v0 }
   0x3   :  { %14 = vsyncpa [#allocation5], 0 }
   0x4   :  { %15 = vsyncpa [#allocation7], 0  ;;  %s1526_s26 = smov [#allocation6]  }
   0x5   :  { %s31_s27 = sshll.u32 %s1526_s26, 4  ;;  %s32_s27 = int_to_ptr.vmem [resolvable:$true] %s31_s27 }
   0x6   :  { %s1470_s28 = scalar_lea.vmem %s32_s27, 8192  ;;  %p1475_p1 = scmp.lt.s32.totalorder %s32_s27, %s32_s27 }
   0x7   :  { %p1471_p0 = scmp.ne.s32.totalorder %s32_s27, %s1470_s28  ;;  %p1476_p2 = scmp.lt.s32.totalorder %s1470_s28, %s1470_s28 }
   0x9   :  { %p1477_p3 = por %p1476_p2, %p1475_p1 }
   0xb   :  { %p1478_p4 = pnand %p1477_p3, %p1471_p0 }
   0xd   :  { %1481 = shalt.err (!%p1478_p4)
}
   0xe   :  { %s1527_s29 = smov 256   ;;  %s1528_s30 = smov 16  }
   0xf   :  { %37 = dma.hbm_to_vmem [thread:$0]  %s1608_s1, 8192, %s32_s27, [#allocation7], %s1527_s29, %s1527_s29, %s1528_s30  }
  0x10   :  { %s1529_s6 = smov [#allocation4]   ;;  %s1530_s11 = smov [#allocation8]  }
  0x11   :  { %s22_s10 = sshll.u32 %s1529_s6, 4  ;;  %s45_s12 = sshll.u32 %s1530_s11, 4  ;;  %s23_s10 = int_to_ptr.vmem [resolvable:$true] %s22_s10  ;;  %s46_s12 = int_to_ptr.vmem [resolvable:$true] %s45_s12 }
  0x12   :  { %s1490_s13 = scalar_lea.vmem %s23_s10, 256  ;;  %p1495_p6 = scmp.lt.s32.totalorder %s23_s10, %s23_s10 }
  0x13   :  { %p1491_p5 = scmp.ne.s32.totalorder %s23_s10, %s1490_s13  ;;  %p1496_p7 = scmp.lt.s32.totalorder %s1490_s13, %s1490_s13 }
  0x15   :  { %p1497_p8 = por %p1496_p7, %p1495_p6 }
  0x17   :  { %p1498_p9 = pnand %p1497_p8, %p1491_p5 }
  0x19   :  { %1501 = shalt.err (!%p1498_p9)
}
  0x1a   :  { %25 = dma.hbm_to_vmem [thread:$0]  %s1607_s0, 256, %s23_s10, [#allocation5]  }
  0x1b   :  { %s1510_s16 = scalar_lea.vmem %s46_s12, 8192  ;;  %p1515_p11 = scmp.lt.s32.totalorder %s46_s12, %s46_s12 }
  0x1c   :  { %p1511_p10 = scmp.ne.s32.totalorder %s46_s12, %s1510_s16  ;;  %p1516_p12 = scmp.lt.s32.totalorder %s1510_s16, %s1510_s16 }
  0x1e   :  { %p1517_p13 = por %p1516_p12, %p1515_p11 }
  0x20   :  { %p1518_p0 = pnand %p1517_p13, %p1511_p10 }
  0x22   :  { %1521 = shalt.err (!%p1518_p0)
}
  0x23   :  { %s1531_s1 = smov 128   ;;  %s1532_s17 = smov 8  }
  0x24   :  { %51 = dma.hbm_to_vmem [thread:$0]  %s1610_s3, 8192, %s46_s12, [#allocation7], %s1531_s1, %s1531_s1, %s1532_s17  }
  0x25   :  { %1522 = dma.done.wait [#allocation5], 256  }
  0x26   :  { %1523 = vsyncadd [#allocation5], 4294967040 }
  0x27   :  { %1524 = dma.done.wait [#allocation7], 16384  }
  0x28   :  { %1525 = vsyncadd [#allocation7], 4294950912  ;;  %v1266_v1 = vld [vmem:[#allocation6 + $0xe4] ss:$16 sps:$4 sm:$0xff]   ;;  %v1268_v2 = vld [vmem:[#allocation6 + $0xec] ss:$16 sps:$4 sm:$0xff]  }
  0x29   :  { %467 = vmatprep.subr.bf16.mxu0 %v1266_v1  ;;  %v1270_v3 = vld [vmem:[#allocation6 + $0xe0] ss:$16 sps:$4 sm:$0xff]   ;;  %v1271_v4 = vld [vmem:[#allocation6 + $0xe8] ss:$16 sps:$4 sm:$0xff]   ;;  %508 = vmatprep.subr.bf16.mxu1 %v1268_v2  ;;  %v1272_v5 = vld [vmem:[#allocation6 + $0xc4] ss:$16 sps:$4 sm:$0xff]  }
  0x2a   :  { %468 = vmatpush1.bf16.msra.mxu0 %v1270_v3  ;;  %509 = vmatpush1.bf16.msra.mxu1 %v1271_v4  ;;  %v1274_v6 = vld [vmem:[#allocation6 + $0xcc] ss:$16 sps:$4 sm:$0xff]   ;;  %v1276_v7 = vld [vmem:[#allocation6 + $0xc0] ss:$16 sps:$4 sm:$0xff]   ;;  %v1277_v8 = vld [vmem:[#allocation6 + $0xc8] ss:$16 sps:$4 sm:$0xff]  }
  0x2b   :  { %469 = vmatprep.subr.bf16.mxu0 %v1272_v5  ;;  %510 = vmatprep.subr.bf16.mxu1 %v1274_v6  ;;  %v1278_v9 = vld [vmem:[#allocation6 + $0xa4] ss:$16 sps:$4 sm:$0xff]   ;;  %v1280_v10 = vld [vmem:[#allocation6 + $0xac] ss:$16 sps:$4 sm:$0xff]   ;;  %v1282_v11 = vld [vmem:[#allocation6 + $0xa0] ss:$16 sps:$4 sm:$0xff]  }
  0x2c   :  { %v1283_v12 = vld [vmem:[#allocation6 + $0xa8] ss:$16 sps:$4 sm:$0xff]   ;;  %v1284_v13 = vld [vmem:[#allocation6 + $0x84] ss:$16 sps:$4 sm:$0xff]   ;;  %v1286_v14 = vld [vmem:[#allocation6 + $0x8c] ss:$16 sps:$4 sm:$0xff]  }
  0x2d   :  { %v1288_v15 = vld [vmem:[#allocation6 + $0x80] ss:$16 sps:$4 sm:$0xff]   ;;  %v1289_v16 = vld [vmem:[#allocation6 + $0x88] ss:$16 sps:$4 sm:$0xff]   ;;  %v1290_v17 = vld [vmem:[#allocation6 + $0x64] ss:$16 sps:$4 sm:$0xff]  }
  0x2e   :  { %470 = vmatpush1.bf16.msra.mxu0 %v1276_v7  ;;  %511 = vmatpush1.bf16.msra.mxu1 %v1277_v8  ;;  %v1292_v18 = vld [vmem:[#allocation6 + $0x6c] ss:$16 sps:$4 sm:$0xff]   ;;  %v1294_v19 = vld [vmem:[#allocation6 + $0x60] ss:$16 sps:$4 sm:$0xff]   ;;  %v1295_v20 = vld [vmem:[#allocation6 + $0x68] ss:$16 sps:$4 sm:$0xff]  }
  0x2f   :  { %471 = vmatprep.subr.bf16.mxu0 %v1278_v9  ;;  %512 = vmatprep.subr.bf16.mxu1 %v1280_v10  ;;  %v1296_v21 = vld [vmem:[#allocation6 + $0x44] ss:$16 sps:$4 sm:$0xff]   ;;  %v1298_v22 = vld [vmem:[#allocation6 + $0x4c] ss:$16 sps:$4 sm:$0xff]   ;;  %v1300_v23 = vld [vmem:[#allocation6 + $0x40] ss:$16 sps:$4 sm:$0xff]  }
  0x30   :  { %v1301_v24 = vld [vmem:[#allocation6 + $0x48] ss:$16 sps:$4 sm:$0xff]   ;;  %v1302_v25 = vld [vmem:[#allocation6 + $0x24] ss:$16 sps:$4 sm:$0xff]   ;;  %v1304_v26 = vld [vmem:[#allocation6 + $0x2c] ss:$16 sps:$4 sm:$0xff]  }
  0x31   :  { %v1306_v27 = vld [vmem:[#allocation6 + $0x20] ss:$16 sps:$4 sm:$0xff]   ;;  %v1307_v28 = vld [vmem:[#allocation6 + $0x28] ss:$16 sps:$4 sm:$0xff]   ;;  %v1308_v29 = vld [vmem:[#allocation6 + $0x4] ss:$16 sps:$4 sm:$0xff]  }
  0x32   :  { %472 = vmatpush1.bf16.msra.mxu0 %v1282_v11  ;;  %513 = vmatpush1.bf16.msra.mxu1 %v1283_v12  ;;  %v1310_v30 = vld [vmem:[#allocation6 + $0xc] ss:$16 sps:$4 sm:$0xff]   ;;  %v1312_v31 = vld [vmem:[#allocation6] ss:$16 sps:$4 sm:$0xff]   ;;  %v1313_v32 = vld [vmem:[#allocation6 + $0x8] ss:$16 sps:$4 sm:$0xff]  }
  0x33   :  { %473 = vmatprep.subr.bf16.mxu0 %v1284_v13  ;;  %514 = vmatprep.subr.bf16.mxu1 %v1286_v14  ;;  %v1314_v33 = vld [vmem:[#allocation6 + $0x1e4] ss:$16 sps:$4 sm:$0xff]   ;;  %v1316_v34 = vld [vmem:[#allocation6 + $0x1ec] ss:$16 sps:$4 sm:$0xff]   ;;  %v1318_v35 = vld [vmem:[#allocation6 + $0x1e0] ss:$16 sps:$4 sm:$0xff]  }
  0x34   :  { %v1319_v36 = vld [vmem:[#allocation6 + $0x1e8] ss:$16 sps:$4 sm:$0xff]   ;;  %v1320_v37 = vld [vmem:[#allocation6 + $0x1c4] ss:$16 sps:$4 sm:$0xff]   ;;  %v1322_v38 = vld [vmem:[#allocation6 + $0x1cc] ss:$16 sps:$4 sm:$0xff]  }
  0x35   :  { %v1324_v39 = vld [vmem:[#allocation6 + $0x1c0] ss:$16 sps:$4 sm:$0xff]   ;;  %v1325_v40 = vld [vmem:[#allocation6 + $0x1c8] ss:$16 sps:$4 sm:$0xff]   ;;  %v1326_v41 = vld [vmem:[#allocation6 + $0x1a4] ss:$16 sps:$4 sm:$0xff]  }
  0x36   :  { %474 = vmatpush1.bf16.msra.mxu0 %v1288_v15  ;;  %515 = vmatpush1.bf16.msra.mxu1 %v1289_v16  ;;  %v1328_v42 = vld [vmem:[#allocation6 + $0x1ac] ss:$16 sps:$4 sm:$0xff]   ;;  %v1330_v43 = vld [vmem:[#allocation6 + $0x1a0] ss:$16 sps:$4 sm:$0xff]   ;;  %v1331_v44 = vld [vmem:[#allocation6 + $0x1a8] ss:$16 sps:$4 sm:$0xff]  }
  0x37   :  { %475 = vmatprep.subr.bf16.mxu0 %v1290_v17  ;;  %516 = vmatprep.subr.bf16.mxu1 %v1292_v18  ;;  %v1332_v45 = vld [vmem:[#allocation6 + $0x184] ss:$16 sps:$4 sm:$0xff]   ;;  %v1334_v46 = vld [vmem:[#allocation6 + $0x18c] ss:$16 sps:$4 sm:$0xff]   ;;  %v1336_v49 = vld [vmem:[#allocation6 + $0x180] ss:$16 sps:$4 sm:$0xff]  }
  0x38   :  { %v76_v47 = vld [vmem:[#allocation4 + $0x8] sm:$0xff]  ;;  %v1338_v51 = vld [vmem:[#allocation6 + $0x164] ss:$16 sps:$4 sm:$0xff]   ;;  %v1342_v53 = vld [vmem:[#allocation6 + $0x160] ss:$16 sps:$4 sm:$0xff]   ;;  %vm1121_vm6 = vcmask 7168  }
  0x39   :  { %v78_v48 = vpack.c.bf16 %v76_v47, %v76_v47  ;;  %v1337_v50 = vld [vmem:[#allocation6 + $0x188] ss:$16 sps:$4 sm:$0xff]   ;;  %v1340_v52 = vld [vmem:[#allocation6 + $0x16c] ss:$16 sps:$4 sm:$0xff]   ;;  %v1344_v55 = vld [vmem:[#allocation6 + $0x144] ss:$16 sps:$4 sm:$0xff]  }
  0x3a   :  { %476 = vmatpush1.bf16.msra.mxu0 %v1294_v19  ;;  %517 = vmatpush1.bf16.msra.mxu1 %v1295_v20  ;;  %v1343_v54 = vld [vmem:[#allocation6 + $0x168] ss:$16 sps:$4 sm:$0xff]   ;;  %v1346_v56 = vld [vmem:[#allocation6 + $0x14c] ss:$16 sps:$4 sm:$0xff]   ;;  %v1348_v57 = vld [vmem:[#allocation6 + $0x140] ss:$16 sps:$4 sm:$0xff]  }
  0x3b   :  { %477 = vmatprep.subr.bf16.mxu0 %v1296_v21  ;;  %518 = vmatprep.subr.bf16.mxu1 %v1298_v22  ;;  %v1349_v58 = vld [vmem:[#allocation6 + $0x148] ss:$16 sps:$4 sm:$0xff]   ;;  %v1350_v59 = vld [vmem:[#allocation6 + $0x124] ss:$16 sps:$4 sm:$0xff]   ;;  %v1352_v60 = vld [vmem:[#allocation6 + $0x12c] ss:$16 sps:$4 sm:$0xff]  }
  0x3c   :  { %499 = vmatprep.mubr.bf16.mxu0 %v78_v48  ;;  %540 = vmatprep.mubr.bf16.mxu1 %v78_v48  ;;  %v1354_v61 = vld [vmem:[#allocation6 + $0x120] ss:$16 sps:$4 sm:$0xff]   ;;  %v1355_v62 = vld [vmem:[#allocation6 + $0x128] ss:$16 sps:$4 sm:$0xff]   ;;  %v1356_v63 = vld [vmem:[#allocation6 + $0x104] ss:$16 sps:$4 sm:$0xff]  }
  0x3d   :  { %v1358_v0 = vld [vmem:[#allocation6 + $0x10c] ss:$16 sps:$4 sm:$0xff]   ;;  %v1360_v1 = vld [vmem:[#allocation6 + $0x100] ss:$16 sps:$4 sm:$0xff]   ;;  %v1361_v2 = vld [vmem:[#allocation6 + $0x108] ss:$16 sps:$4 sm:$0xff]  }
  0x3e   :  { %478 = vmatpush1.bf16.msra.mxu0 %v1300_v23  ;;  %519 = vmatpush1.bf16.msra.mxu1 %v1301_v24  ;;  %v75_v3 = vld [vmem:[#allocation4] sm:$0xff]  ;;  %v1370_v9 = vld [vmem:[#allocation8 + $0x64] ss:$8 sps:$4 sm:$0xff]   ;;  %v1368_v11 = vld [vmem:[#allocation8 + $0x60] ss:$8 sps:$4 sm:$0xff]  }
  0x3f   :  { %479 = vmatprep.subr.bf16.mxu0 %v1302_v25  ;;  %520 = vmatprep.subr.bf16.mxu1 %v1304_v26  ;;  %v1364_v4 = vld [vmem:[#allocation8 + $0x74] ss:$8 sps:$4 sm:$0xff]   ;;  %v77_v6 = vpack.c.bf16 %v75_v3, %v75_v3  ;;  %v1362_v7 = vld [vmem:[#allocation8 + $0x70] ss:$8 sps:$4 sm:$0xff]   ;;  %v1373_v10 = vld [vmem:[#allocation8 + $0x164] ss:$8 sps:$4 sm:$0xff]  }
  0x40   :  { %v1367_v5 = vld [vmem:[#allocation8 + $0x174] ss:$8 sps:$4 sm:$0xff]   ;;  %v1365_v8 = vld [vmem:[#allocation8 + $0x170] ss:$8 sps:$4 sm:$0xff]   ;;  %v1371_v12 = vld [vmem:[#allocation8 + $0x160] ss:$8 sps:$4 sm:$0xff]  }
  0x41   :  { %v1376_v13 = vld [vmem:[#allocation8 + $0x54] ss:$8 sps:$4 sm:$0xff]   ;;  %v1374_v15 = vld [vmem:[#allocation8 + $0x50] ss:$8 sps:$4 sm:$0xff]   ;;  %v1382_v17 = vld [vmem:[#allocation8 + $0x44] ss:$8 sps:$4 sm:$0xff]  }
  0x42   :  { %480 = vmatpush1.bf16.msra.mxu0 %v1306_v27  ;;  %521 = vmatpush1.bf16.msra.mxu1 %v1307_v28  ;;  %v1379_v14 = vld [vmem:[#allocation8 + $0x154] ss:$8 sps:$4 sm:$0xff]   ;;  %v1377_v16 = vld [vmem:[#allocation8 + $0x150] ss:$8 sps:$4 sm:$0xff]   ;;  %v1385_v18 = vld [vmem:[#allocation8 + $0x144] ss:$8 sps:$4 sm:$0xff]  }
  0x43   :  { %481 = vmatprep.subr.bf16.mxu0 %v1308_v29  ;;  %522 = vmatprep.subr.bf16.mxu1 %v1310_v30  ;;  %v1380_v19 = vld [vmem:[#allocation8 + $0x40] ss:$8 sps:$4 sm:$0xff]   ;;  %v1388_v21 = vld [vmem:[#allocation8 + $0x34] ss:$8 sps:$4 sm:$0xff]   ;;  %v1386_v23 = vld [vmem:[#allocation8 + $0x30] ss:$8 sps:$4 sm:$0xff]  }
  0x44   :  { %v1383_v20 = vld [vmem:[#allocation8 + $0x140] ss:$8 sps:$4 sm:$0xff]   ;;  %v1391_v22 = vld [vmem:[#allocation8 + $0x134] ss:$8 sps:$4 sm:$0xff]   ;;  %v1389_v24 = vld [vmem:[#allocation8 + $0x130] ss:$8 sps:$4 sm:$0xff]  }
  0x45   :  { %v1394_v25 = vld [vmem:[#allocation8 + $0x24] ss:$8 sps:$4 sm:$0xff]   ;;  %v1392_v27 = vld [vmem:[#allocation8 + $0x20] ss:$8 sps:$4 sm:$0xff]   ;;  %v1400_v29 = vld [vmem:[#allocation8 + $0x14] ss:$8 sps:$4 sm:$0xff]  }
  0x46   :  { %482 = vmatpush1.bf16.msra.mxu0 %v1312_v31  ;;  %523 = vmatpush1.bf16.msra.mxu1 %v1313_v32  ;;  %v1397_v26 = vld [vmem:[#allocation8 + $0x124] ss:$8 sps:$4 sm:$0xff]   ;;  %v1395_v28 = vld [vmem:[#allocation8 + $0x120] ss:$8 sps:$4 sm:$0xff]   ;;  %v1403_v30 = vld [vmem:[#allocation8 + $0x114] ss:$8 sps:$4 sm:$0xff]  }
  0x47   :  { %483 = vmatprep.subr.bf16.mxu0 %v1314_v33  ;;  %524 = vmatprep.subr.bf16.mxu1 %v1316_v34  ;;  %v1398_v31 = vld [vmem:[#allocation8 + $0x10] ss:$8 sps:$4 sm:$0xff]   ;;  %v1406_v33 = vld [vmem:[#allocation8 + $0x4] ss:$8 sps:$4 sm:$0xff]   ;;  %v1455_v3 = vld [vmem:[#allocation8 + $0x180] ss:$8 sps:$4 sm:$0xff]  }
  0x48   :  { %v1401_v32 = vld [vmem:[#allocation8 + $0x110] ss:$8 sps:$4 sm:$0xff]   ;;  %v1409_v34 = vld [vmem:[#allocation8 + $0x104] ss:$8 sps:$4 sm:$0xff]  }
  0x49   :  { %v1422_v47 = vld [vmem:[#allocation8 + $0xd0] ss:$8 sps:$4 sm:$0xff]  }
  0x4a   :  { %484 = vmatpush2.bf16.msra.mxu0 %v1318_v35  ;;  %525 = vmatpush2.bf16.msra.mxu1 %v1319_v36  ;;  %v1404_v35 = vld [vmem:[#allocation8] ss:$8 sps:$4 sm:$0xff]   ;;  %v1425_v48 = vld [vmem:[#allocation8 + $0x1d0] ss:$8 sps:$4 sm:$0xff]  }
  0x4b   :  { %485 = vmatprep.subr.bf16.mxu0 %v1320_v37  ;;  %526 = vmatprep.subr.bf16.mxu1 %v1322_v38  ;;  %v1407_v36 = vld [vmem:[#allocation8 + $0x100] ss:$8 sps:$4 sm:$0xff]   ;;  %v1412_v37 = vld [vmem:[#allocation8 + $0xf4] ss:$8 sps:$4 sm:$0xff]  }
  0x4c   :  { %v1415_v38 = vld [vmem:[#allocation8 + $0x1f4] ss:$8 sps:$4 sm:$0xff]  }
  0x4e   :  { %486 = vmatpush2.bf16.msra.mxu0 %v1324_v39  ;;  %527 = vmatpush2.bf16.msra.mxu1 %v1325_v40  ;;  %v1410_v39 = vld [vmem:[#allocation8 + $0xf0] ss:$8 sps:$4 sm:$0xff]  }
  0x4f   :  { %487 = vmatprep.subr.bf16.mxu0 %v1326_v41  ;;  %528 = vmatprep.subr.bf16.mxu1 %v1328_v42  ;;  %v1413_v40 = vld [vmem:[#allocation8 + $0x1f0] ss:$8 sps:$4 sm:$0xff]   ;;  %v1418_v41 = vld [vmem:[#allocation8 + $0xe4] ss:$8 sps:$4 sm:$0xff]  }
  0x50   :  { %v1421_v42 = vld [vmem:[#allocation8 + $0x1e4] ss:$8 sps:$4 sm:$0xff]  }
  0x52   :  { %488 = vmatpush2.bf16.msra.mxu0 %v1330_v43  ;;  %529 = vmatpush2.bf16.msra.mxu1 %v1331_v44  ;;  %v1416_v43 = vld [vmem:[#allocation8 + $0xe0] ss:$8 sps:$4 sm:$0xff]  }
  0x53   :  { %489 = vmatprep.subr.bf16.mxu0 %v1332_v45  ;;  %530 = vmatprep.subr.bf16.mxu1 %v1334_v46  ;;  %v1419_v44 = vld [vmem:[#allocation8 + $0x1e0] ss:$8 sps:$4 sm:$0xff]   ;;  %v1424_v45 = vld [vmem:[#allocation8 + $0xd4] ss:$8 sps:$4 sm:$0xff]  }
  0x54   :  { %v1427_v46 = vld [vmem:[#allocation8 + $0x1d4] ss:$8 sps:$4 sm:$0xff]  }
  0x56   :  { %490 = vmatpush2.bf16.msra.mxu0 %v1336_v49  ;;  %531 = vmatpush2.bf16.msra.mxu1 %v1337_v50  ;;  %v1430_v49 = vld [vmem:[#allocation8 + $0xc4] ss:$8 sps:$4 sm:$0xff]  }
  0x57   :  { %491 = vmatprep.subr.bf16.mxu0 %v1338_v51  ;;  %532 = vmatprep.subr.bf16.mxu1 %v1340_v52  ;;  %v1433_v50 = vld [vmem:[#allocation8 + $0x1c4] ss:$8 sps:$4 sm:$0xff]   ;;  %v1428_v51 = vld [vmem:[#allocation8 + $0xc0] ss:$8 sps:$4 sm:$0xff]  }
  0x58   :  { %v1431_v52 = vld [vmem:[#allocation8 + $0x1c0] ss:$8 sps:$4 sm:$0xff]  }
  0x5a   :  { %492 = vmatpush2.bf16.msra.mxu0 %v1342_v53  ;;  %533 = vmatpush2.bf16.msra.mxu1 %v1343_v54  ;;  %v1436_v53 = vld [vmem:[#allocation8 + $0xb4] ss:$8 sps:$4 sm:$0xff]  }
  0x5b   :  { %493 = vmatprep.subr.bf16.mxu0 %v1344_v55  ;;  %534 = vmatprep.subr.bf16.mxu1 %v1346_v56  ;;  %v1439_v54 = vld [vmem:[#allocation8 + $0x1b4] ss:$8 sps:$4 sm:$0xff]   ;;  %v1434_v55 = vld [vmem:[#allocation8 + $0xb0] ss:$8 sps:$4 sm:$0xff]  }
  0x5c   :  { %v1437_v56 = vld [vmem:[#allocation8 + $0x1b0] ss:$8 sps:$4 sm:$0xff]  }
  0x5e   :  { %494 = vmatpush2.bf16.msra.mxu0 %v1348_v57  ;;  %535 = vmatpush2.bf16.msra.mxu1 %v1349_v58  ;;  %v1442_v57 = vld [vmem:[#allocation8 + $0xa4] ss:$8 sps:$4 sm:$0xff]  }
  0x5f   :  { %495 = vmatprep.subr.bf16.mxu0 %v1350_v59  ;;  %536 = vmatprep.subr.bf16.mxu1 %v1352_v60  ;;  %v1445_v58 = vld [vmem:[#allocation8 + $0x1a4] ss:$8 sps:$4 sm:$0xff]   ;;  %v1440_v59 = vld [vmem:[#allocation8 + $0xa0] ss:$8 sps:$4 sm:$0xff]  }
  0x60   :  { %v1443_v60 = vld [vmem:[#allocation8 + $0x1a0] ss:$8 sps:$4 sm:$0xff]  }
  0x62   :  { %496 = vmatpush2.bf16.msra.mxu0 %v1354_v61  ;;  %537 = vmatpush2.bf16.msra.mxu1 %v1355_v62  ;;  %v1448_v61 = vld [vmem:[#allocation8 + $0x94] ss:$8 sps:$4 sm:$0xff]  }
  0x63   :  { %497 = vmatprep.subr.bf16.mxu0 %v1356_v63  ;;  %538 = vmatprep.subr.bf16.mxu1 %v1358_v0  ;;  %v1451_v62 = vld [vmem:[#allocation8 + $0x194] ss:$8 sps:$4 sm:$0xff]   ;;  %v1446_v63 = vld [vmem:[#allocation8 + $0x90] ss:$8 sps:$4 sm:$0xff]  }
  0x64   :  { %v1449_v0 = vld [vmem:[#allocation8 + $0x190] ss:$8 sps:$4 sm:$0xff]  }
  0x66   :  { %498 = vmatpush2.bf16.msra.mxu0 %v1360_v1  ;;  %539 = vmatpush2.bf16.msra.mxu1 %v1361_v2  ;;  %v1452_v1 = vld [vmem:[#allocation8 + $0x80] ss:$8 sps:$4 sm:$0xff]   ;;  %v1454_v2 = vld [vmem:[#allocation8 + $0x84] ss:$8 sps:$4 sm:$0xff]  }
  0x67   :  { %1002 = vmatprep.subr.bf16.mxu0 %v1364_v4  ;;  %1043 = vmatprep.subr.bf16.mxu1 %v1367_v5  ;;  %v1457_v4 = vld [vmem:[#allocation8 + $0x184] ss:$8 sps:$4 sm:$0xff]   ;;  %v566_v5 = vlaneseq }
  0x69   :  { %500 = vmatmul.mubr.bf16.vlgmr.msra.gmra.mxu0 %v77_v6  ;;  %541 = vmatmul.mubr.bf16.vlgmr.msra.gmra.mxu1 %v77_v6  ;;  %v567_v6 = vshrl.u32 %v566_v5, 7 }
  0x6a   :  { %1003 = vmatpush1.bf16.msra.mxu0 %v1362_v7  ;;  %1044 = vmatpush1.bf16.msra.mxu1 %v1365_v8 }
  0x6b   :  { %1004 = vmatprep.subr.bf16.mxu0 %v1370_v9  ;;  %1045 = vmatprep.subr.bf16.mxu1 %v1373_v10  ;;  %v1585_v7 = vsub.s32 0, %v567_v6  ;;  %v576_v8 = vsub.s32 2, %v567_v6  ;;  %v564_v9 = vld [vmem:[%s1609_s2] sm:$0xf]  ;;  %v1590_v10 = vsub.s32 1, %v567_v6 }
  0x6e   :  { %1005 = vmatpush1.bf16.msra.mxu0 %v1368_v11  ;;  %1046 = vmatpush1.bf16.msra.mxu1 %v1371_v12  ;;  %v580_v11 = vsub.s32 3, %v567_v6  ;;  %v569_v12 = vrot.slane %v564_v9, %v1585_v7 }
  0x6f   :  { %1006 = vmatprep.subr.bf16.mxu0 %v1376_v13  ;;  %1047 = vmatprep.subr.bf16.mxu1 %v1379_v14  ;;  %v577_v13 = vrot.slane %v564_v9, %v576_v8 }
  0x72   :  { %1007 = vmatpush1.bf16.msra.mxu0 %v1374_v15  ;;  %1048 = vmatpush1.bf16.msra.mxu1 %v1377_v16  ;;  %v573_v16 = vrot.slane %v564_v9, %v1590_v10 }
  0x73   :  { %1008 = vmatprep.subr.bf16.mxu0 %v1382_v17  ;;  %1049 = vmatprep.subr.bf16.mxu1 %v1385_v18  ;;  %v581_v17 = vrot.slane %v564_v9, %v580_v11 }
  0x76   :  { %1009 = vmatpush1.bf16.msra.mxu0 %v1380_v19  ;;  %1050 = vmatpush1.bf16.msra.mxu1 %v1383_v20 }
  0x77   :  { %1010 = vmatprep.subr.bf16.mxu0 %v1388_v21  ;;  %1051 = vmatprep.subr.bf16.mxu1 %v1391_v22 }
  0x7a   :  { %1011 = vmatpush1.bf16.msra.mxu0 %v1386_v23  ;;  %1052 = vmatpush1.bf16.msra.mxu1 %v1389_v24 }
  0x7b   :  { %1012 = vmatprep.subr.bf16.mxu0 %v1394_v25  ;;  %1053 = vmatprep.subr.bf16.mxu1 %v1397_v26 }
  0x7e   :  { %1013 = vmatpush1.bf16.msra.mxu0 %v1392_v27  ;;  %1054 = vmatpush1.bf16.msra.mxu1 %v1395_v28 }
  0x7f   :  { %1014 = vmatprep.subr.bf16.mxu0 %v1400_v29  ;;  %1055 = vmatprep.subr.bf16.mxu1 %v1403_v30 }
  0x82   :  { %1015 = vmatpush1.bf16.msra.mxu0 %v1398_v31  ;;  %1056 = vmatpush1.bf16.msra.mxu1 %v1401_v32 }
  0x83   :  { %1016 = vmatprep.subr.bf16.mxu0 %v1406_v33  ;;  %1057 = vmatprep.subr.bf16.mxu1 %v1409_v34 }
  0x86   :  { %1017 = vmatpush1.bf16.msra.mxu0 %v1404_v35  ;;  %1058 = vmatpush1.bf16.msra.mxu1 %v1407_v36 }
  0x87   :  { %1018 = vmatprep.subr.bf16.mxu0 %v1412_v37  ;;  %1059 = vmatprep.subr.bf16.mxu1 %v1415_v38 }
  0x8a   :  { %1019 = vmatpush2.bf16.msra.mxu0 %v1410_v39  ;;  %1060 = vmatpush2.bf16.msra.mxu1 %v1413_v40  ;;  %v670_v40 = vld [vmem:[%s1611_s4] sm:$0x3] }
  0x8b   :  { %1020 = vmatprep.subr.bf16.mxu0 %v1418_v41  ;;  %1061 = vmatprep.subr.bf16.mxu1 %v1421_v42  ;;  %v675_v41 = vrot.slane %v670_v40, %v1585_v7  ;;  %v679_v42 = vrot.slane %v670_v40, %v1590_v10 }
  0x8e   :  { %1021 = vmatpush2.bf16.msra.mxu0 %v1416_v43  ;;  %1062 = vmatpush2.bf16.msra.mxu1 %v1419_v44 }
  0x8f   :  { %1022 = vmatprep.subr.bf16.mxu0 %v1424_v45  ;;  %1063 = vmatprep.subr.bf16.mxu1 %v1427_v46 }
  0x92   :  { %1023 = vmatpush2.bf16.msra.mxu0 %v1422_v47  ;;  %1064 = vmatpush2.bf16.msra.mxu1 %v1425_v48 }
  0x93   :  { %1024 = vmatprep.subr.bf16.mxu0 %v1430_v49  ;;  %1065 = vmatprep.subr.bf16.mxu1 %v1433_v50  ;;  %v1090_v50 = vld [vmem:[%s1612_s5] sm:$0x3] }
  0x96   :  { %1025 = vmatpush2.bf16.msra.mxu0 %v1428_v51  ;;  %1066 = vmatpush2.bf16.msra.mxu1 %v1431_v52 }
  0x97   :  { %1026 = vmatprep.subr.bf16.mxu0 %v1436_v53  ;;  %1067 = vmatprep.subr.bf16.mxu1 %v1439_v54 }
  0x9a   :  { %1027 = vmatpush2.bf16.msra.mxu0 %v1434_v55  ;;  %1068 = vmatpush2.bf16.msra.mxu1 %v1437_v56  ;;  %v1095_v56 = vrot.slane %v1090_v50, %v1585_v7 }
  0x9b   :  { %1028 = vmatprep.subr.bf16.mxu0 %v1442_v57  ;;  %1069 = vmatprep.subr.bf16.mxu1 %v1445_v58  ;;  %v1099_v57 = vrot.slane %v1090_v50, %v1590_v10 }
  0x9e   :  { %1029 = vmatpush2.bf16.msra.mxu0 %v1440_v59  ;;  %1070 = vmatpush2.bf16.msra.mxu1 %v1443_v60 }
  0x9f   :  { %1030 = vmatprep.subr.bf16.mxu0 %v1448_v61  ;;  %1071 = vmatprep.subr.bf16.mxu1 %v1451_v62 }
  0xa2   :  { %1031 = vmatpush2.bf16.msra.mxu0 %v1446_v63  ;;  %1072 = vmatpush2.bf16.msra.mxu1 %v1449_v0 }
  0xa3   :  { %1032 = vmatprep.subr.bf16.mxu0 %v1454_v2  ;;  %1073 = vmatprep.subr.bf16.mxu1 %v1457_v4 }
  0xa6   :  { %1033 = vmatpush2.bf16.msra.mxu0 %v1452_v1  ;;  %1074 = vmatpush2.bf16.msra.mxu1 %v1455_v3  ;;  %v1257_v1 = vld [vmem:[#allocation3] ss:$0 sm:$0xff] }
 0x129   :  { %v501_v14 = vpop.f32.mrf.mxu0  ;;  %v542_v15 = vpop.f32.mrf.mxu1 }
 0x12a   :  { %v586_v18 = vadd.f32 %v569_v12, %v501_v14  ;;  %v588_v19 = vadd.f32 %v577_v13, %v542_v15 }
 0x12b   :  { %v503_v20 = vpop.f32.mrf.mxu0  ;;  %v544_v21 = vpop.f32.mrf.mxu1 }
 0x12c   :  { %v594_v22 = vmul.f32 0.2, %v586_v18  ;;  %vm590_vm0 = vcmp.gt.f32.partialorder %v586_v18, 0.0  ;;  %v596_v23 = vmul.f32 0.2, %v588_v19  ;;  %v587_v24 = vadd.f32 %v573_v16, %v503_v20 }
 0x12d   :  { %v589_v25 = vadd.f32 %v581_v17, %v544_v21  ;;  %v505_v26 = vpop.f32.mrf.mxu0  ;;  %v546_v27 = vpop.f32.mrf.mxu1  ;;  %vm592_vm1 = vcmp.gt.f32.partialorder %v588_v19, 0.0 }
 0x12e   :  { %vm591_vm2 = vcmp.gt.f32.partialorder %v587_v24, 0.0  ;;  %v595_v28 = vmul.f32 0.2, %v587_v24  ;;  %v598_v31 = vsel %vm590_vm0, %v586_v18, %v594_v22  ;;  %v600_v33 = vsel %vm592_vm1, %v588_v19, %v596_v23 }
 0x12f   :  { %v506_v29 = vpop.f32.mrf.mxu0  ;;  %v547_v30 = vpop.f32.mrf.mxu1  ;;  %vm593_vm3 = vcmp.gt.f32.partialorder %v589_v25, 0.0  ;;  %v597_v32 = vmul.f32 0.2, %v589_v25  ;;  %v602_v37 = vpack.c.bf16 %v598_v31, %v598_v31  ;;  %v604_v39 = vpack.c.bf16 %v600_v33, %v600_v33 }
 0x130   :  { %v599_v34 = vsel %vm591_vm2, %v587_v24, %v595_v28 }
 0x131   :  { %v603_v35 = vpack.c.bf16 %v599_v34, %v599_v34  ;;  %v601_v36 = vsel %vm593_vm3, %v589_v25, %v597_v32 }
 0x132   :  { %v605_v38 = vpack.c.bf16 %v601_v36, %v601_v36 }
 0x133   :  { %1034 = vmatprep.mubr.bf16.mxu0 %v603_v35 }
 0x134   :  { %1075 = vmatprep.mubr.bf16.mxu1 %v605_v38  ;;  %1035 = vmatmul.mubr.bf16.vlgmr.msra.gmra.mxu0 %v602_v37 }
 0x135   :  { %1076 = vmatmul.mubr.bf16.vlgmr.msra.gmra.mxu1 %v604_v39 }
 0x1f4   :  { %v1036_v43 = vpop.f32.mrf.mxu0 }
 0x1f5   :  { %v1037_v44 = vadd.f32 %v1036_v43, %v675_v41  ;;  %v1077_v45 = vpop.f32.mrf.mxu1 }
 0x1f6   :  { %v1038_v46 = vpop.f32.mrf.mxu0 }
 0x1f7   :  { %v1078_v47 = vadd.f32 %v1077_v45, %v1037_v44  ;;  %v1039_v48 = vadd.f32 %v1038_v46, %v679_v42  ;;  %v1079_v49 = vpop.f32.mrf.mxu1 }
 0x1f8   :  { %v1040_v51 = vpop.f32.mrf.mxu0 }
 0x1f9   :  { %vm1084_vm4 = vcmp.gt.f32.partialorder %v1078_v47, 0.0  ;;  %v1086_v52 = vmul.f32 0.2, %v1078_v47  ;;  %v1080_v53 = vadd.f32 %v1079_v49, %v1039_v48  ;;  %v1081_v54 = vpop.f32.mrf.mxu1 }
 0x1fa   :  { %v1041_v55 = vpop.f32.mrf.mxu0 }
 0x1fb   :  { %vm1085_vm5 = vcmp.gt.f32.partialorder %v1080_v53, 0.0  ;;  %v1087_v58 = vmul.f32 0.2, %v1080_v53  ;;  %v1082_v59 = vpop.f32.mrf.mxu1  ;;  %v1088_v60 = vsel %vm1084_vm4, %v1078_v47, %v1086_v52 }
 0x1fc   :  { %v1102_v62 = vmul.f32 %v1095_v56, %v1088_v60 }
 0x1fd   :  { %v1089_v61 = vsel %vm1085_vm5, %v1080_v53, %v1087_v58 }
 0x1fe   :  { %v1103_v63 = vmul.f32 %v1099_v57, %v1089_v61 }
 0x200   :  { %v1104_v0 = vadd.f32 %v1103_v63, %v1102_v62 }
 0x202   :  { %1105 = vadd.xlane.f32.xlu0 %v1104_v0 }
 0x28b   :  { %v1106_v2 = vpop.xlane.xlu0 %1105 }
 0x28c   :  { %v1114_v3 = vadd.f32 %v1257_v1, %v1106_v2 }
 0x28e   :  { %v1258_v4 = vmul.f32 -1.442695, %v1114_v3 }
 0x290   :  { %1458 = vpow2.f32 %v1258_v4 }
 0x29d   :  { %v1459_v5 = vpop.eup %1458 }
 0x29e   :  { %v1118_v6 = vadd.f32 1.0, %v1459_v5 }
 0x2a0   :  { %1460 = vrcp.f32 %v1118_v6 }
 0x2ad   :  { %v1461_v7 = vpop.eup %1460 }
 0x2ae   :  { %1122 = vst.msk [vmem:[%s1614_s7] sm:$0xff] %vm1121_vm6, %v1461_v7 }
 0x2af   :  { %1127 = vsyncpa [#allocation5], 1 }
 0x2b0   :  { %1128 = vsyncpa [#allocation7], 1 }

</bundles_post_ra>
